<compile_context>
chip_gen: v7x
topology: tpu7x:2x2x1
jax: 0.10.0
libtpu: 0.0.40
codegen_flags: <defaults>
</compile_context>

<pallas_src>
import jax
import jax.numpy as jnp
from jax.experimental import pallas as pl
from jax.experimental.pallas import tpu as pltpu


def _round_up(x, m):
    return (x + m - 1) // m * m


# ---------------------------------------------------------------------------
# Kernels
# ---------------------------------------------------------------------------
def _ws_matmul_bn_silu_kernel(x_ref, w_ref, scale_ref, bias_ref, o_ref):
    """Weight-stationary path: full contraction in ONE MXU matmul + epilogue.

    x_ref    : (TM, K_pad)      bf16 im2col patch tile (streams over M)
    w_ref    : (K_pad, C2_pad)  bf16 folded conv weight (grid-invariant)
    scale_ref: (1, C2_pad)      f32 BN scale = gamma / sqrt(var + eps)
    bias_ref : (1, C2_pad)      f32 BN bias  = beta - mean * scale
    o_ref    : (TM, C2_pad)     output tile
    """
    acc = jnp.dot(x_ref[...], w_ref[...], preferred_element_type=jnp.float32)
    y = acc * scale_ref[...] + bias_ref[...]        # folded BN (f32)
    y = y * jax.nn.sigmoid(y)                       # SiLU (f32)
    o_ref[...] = y.astype(o_ref.dtype)


def _ktiled_matmul_bn_silu_kernel(x_ref, w_ref, scale_ref, bias_ref, o_ref,
                                  acc_ref):
    """Fallback for huge layers: K tiled, f32 VMEM accumulator across it."""
    @pl.when(pl.program_id(2) == 0)
    def _():
        acc_ref[...] = jnp.zeros_like(acc_ref)

    acc_ref[...] += jnp.dot(x_ref[...], w_ref[...],
                            preferred_element_type=jnp.float32)

    @pl.when(pl.program_id(2) == pl.num_programs(2) - 1)
    def _():
        y = acc_ref[...] * scale_ref[...] + bias_ref[...]
        y = y * jax.nn.sigmoid(y)
        o_ref[...] = y.astype(o_ref.dtype)


# ---------------------------------------------------------------------------
# Wrapper
# ---------------------------------------------------------------------------
def conv_bn_silu(x_nchw, weight, gamma, beta, running_mean, running_var,
                 *, stride=1, dilation=1, eps=1e-5, out_dtype=jnp.bfloat16):
    """Forward of ultralytics `Conv` (act=True, groups=1, autopad)."""
    N, C1, Hin, Win = x_nchw.shape
    C2, C1w, KH, KW = weight.shape
    assert C1w == C1, "groups != 1 not supported"
    # TODO(synk): even kernel sizes need ultralytics' asymmetric autopad; only
    # the odd-k 'same' path is implemented here.
    assert KH % 2 == 1 and KW % 2 == 1, "odd kernel sizes only"

    ph = (dilation * (KH - 1) + 1) // 2          # autopad
    pw = (dilation * (KW - 1) + 1) // 2
    Ho = (Hin + 2 * ph - dilation * (KH - 1) - 1) // stride + 1
    Wo = (Win + 2 * pw - dilation * (KW - 1) - 1) // stride + 1

    # ---- wrapper-side layout plumbing (plain JAX), bf16-first --------------
    # TODO(synk): for layers with C1 >= 128, move the KH*KW taps into an extra
    # 'arbitrary' grid reduction axis over an NHWC-padded input (in-kernel
    # im2col) instead of materializing the KH*KW-expanded buffer in HBM.
    x_nhwc = jnp.transpose(x_nchw.astype(jnp.bfloat16), (0, 2, 3, 1))
    x_pad = jnp.pad(x_nhwc, ((0, 0), (ph, ph), (pw, pw), (0, 0)))

    # im2col: stack the KH*KW shifted/strided views along the channel axis so
    # the conv becomes a single (N*Ho*Wo, KH*KW*C1) x (KH*KW*C1, C2) matmul.
    patches = []
    for kh in range(KH):
        for kw in range(KW):
            h0, w0 = kh * dilation, kw * dilation
            patches.append(
                x_pad[:, h0:h0 + (Ho - 1) * stride + 1:stride,
                      w0:w0 + (Wo - 1) * stride + 1:stride, :])
    lhs = jnp.concatenate(patches, axis=-1).reshape(N * Ho * Wo, KH * KW * C1)

    # (C2,C1,KH,KW) -> (KH,KW,C1,C2) -> (KH*KW*C1, C2): rows ordered
    # (kh, kw, c1), matching the im2col concatenation above.
    rhs = jnp.transpose(weight, (2, 3, 1, 0)).reshape(KH * KW * C1, C2)
    rhs = rhs.astype(jnp.bfloat16)

    scale = (gamma / jnp.sqrt(running_var + eps)).astype(jnp.float32)   # (C2,)
    bias = (beta - running_mean * scale).astype(jnp.float32)            # (C2,)

    # ---- lane-dense padding + tile selection --------------------------------
    M, K = lhs.shape
    K_pad = _round_up(K, 128)          # pad contraction only to the next 128
    C2_pad = _round_up(C2, 128)
    out_bytes = jnp.dtype(out_dtype).itemsize

    def _ws_vmem_bytes(tm):
        lhs_b = 2 * tm * K_pad * 2            # double-buffered bf16 lhs tile
        rhs_b = 2 * K_pad * C2_pad * 2        # resident bf16 weight (2x budget)
        out_b = 2 * tm * C2_pad * out_bytes   # double-buffered output tile
        acc_b = 2 * tm * C2_pad * 4           # f32 matmul result + epilogue tmp
        vec_b = 4 * 2 * C2_pad * 4            # scale / bias
        return lhs_b + rhs_b + out_b + acc_b + vec_b

    # Conservative budget so the resident-weight path also fits v7x's 64 MiB
    # physical VMEM per TensorCore with headroom for compiler scratch.
    WS_BUDGET = 40 * 1024 * 1024

    tm_ws = None
    for cand in (512, 256, 128):
        tm = min(cand, _round_up(M, 128))
        if _ws_vmem_bytes(tm) <= WS_BUDGET:
            tm_ws = tm
            break

    scale_p = jnp.pad(scale.reshape(1, C2), ((0, 0), (0, C2_pad - C2)))
    bias_p = jnp.pad(bias.reshape(1, C2), ((0, 0), (0, C2_pad - C2)))
    rhs_p = jnp.pad(rhs, ((0, K_pad - K), (0, C2_pad - C2)))

    if tm_ws is not None:
        # ---- weight-stationary fast path (typical Conv layers) -------------
        tm = tm_ws
        M_pad = _round_up(M, tm)
        lhs_p = jnp.pad(lhs, ((0, M_pad - M), (0, K_pad - K)))

        vmem_limit = min(max(2 * _ws_vmem_bytes(tm), 16 * 1024 * 1024),
                         48 * 1024 * 1024)

        out = pl.pallas_call(
            _ws_matmul_bn_silu_kernel,
            out_shape=jax.ShapeDtypeStruct((M_pad, C2_pad), out_dtype),
            grid_spec=pltpu.PrefetchScalarGridSpec(
                num_scalar_prefetch=0,
                grid=(M_pad // tm,),
                in_specs=[
                    pl.BlockSpec((tm, K_pad), lambda i: (i, 0)),
                    pl.BlockSpec((K_pad, C2_pad), lambda i: (0, 0)),   # resident
                    pl.BlockSpec((1, C2_pad), lambda i: (0, 0)),       # resident
                    pl.BlockSpec((1, C2_pad), lambda i: (0, 0)),       # resident
                ],
                out_specs=pl.BlockSpec((tm, C2_pad), lambda i: (i, 0)),
            ),
            compiler_params=pltpu.CompilerParams(
                dimension_semantics=("parallel",),
                vmem_limit_bytes=vmem_limit,
            ),
        )(lhs_p, rhs_p, scale_p, bias_p)
    else:
        # ---- fallback: 3-D tiled grid with K reduction ----------------------
        tm = min(512, _round_up(M, 128))
        tn = 256 if C2_pad % 256 == 0 else 128
        if K_pad % 512 == 0:
            tk = 512
        elif K_pad % 256 == 0:
            tk = 256
        else:
            tk = 128
        M_pad = _round_up(M, tm)
        lhs_p = jnp.pad(lhs, ((0, M_pad - M), (0, K_pad - K)))

        def _tiled_vmem_bytes():
            return (2 * tm * tk * 2 + 2 * tk * tn * 2 + 2 * tm * tn * out_bytes
                    + tm * tn * 4 + 4 * 2 * tn * 4)

        vmem_limit = min(max(2 * _tiled_vmem_bytes(), 16 * 1024 * 1024),
                         48 * 1024 * 1024)

        out = pl.pallas_call(
            _ktiled_matmul_bn_silu_kernel,
            out_shape=jax.ShapeDtypeStruct((M_pad, C2_pad), out_dtype),
            grid_spec=pltpu.PrefetchScalarGridSpec(
                num_scalar_prefetch=0,
                grid=(M_pad // tm, C2_pad // tn, K_pad // tk),
                in_specs=[
                    pl.BlockSpec((tm, tk), lambda i, j, k: (i, k)),
                    pl.BlockSpec((tk, tn), lambda i, j, k: (k, j)),
                    pl.BlockSpec((1, tn), lambda i, j, k: (0, j)),
                    pl.BlockSpec((1, tn), lambda i, j, k: (0, j)),
                ],
                out_specs=pl.BlockSpec((tm, tn), lambda i, j, k: (i, j)),
                scratch_shapes=[pltpu.VMEM((tm, tn), jnp.float32)],
            ),
            compiler_params=pltpu.CompilerParams(
                dimension_semantics=("parallel", "parallel", "arbitrary"),
                vmem_limit_bytes=vmem_limit,
            ),
        )(lhs_p, rhs_p, scale_p, bias_p)

    # unflatten, drop channel/row padding, back to NCHW (wrapper-side).
    # TODO(synk): in a stacked network keep NHWC (or the lane-dense (M, C2)
    # slab) between Conv blocks and transpose only at the network boundary.
    out = out[:M, :C2].reshape(N, Ho, Wo, C2)
    return jnp.transpose(out, (0, 3, 1, 2))


# ---------------------------------------------------------------------------
# Pure-JAX reference (lax conv + BN + SiLU) for the correctness check.
# ---------------------------------------------------------------------------
def _reference(x_nchw, weight, gamma, beta, running_mean, running_var,
               *, stride=1, dilation=1, eps=1e-5):
    KH, KW = weight.shape[2], weight.shape[3]
    ph = (dilation * (KH - 1) + 1) // 2
    pw = (dilation * (KW - 1) + 1) // 2
    y = jax.lax.conv_general_dilated(
        x_nchw, weight, window_strides=(stride, stride),
        padding=((ph, ph), (pw, pw)),
        rhs_dilation=(dilation, dilation),
        dimension_numbers=("NCHW", "OIHW", "NCHW"))
    s = (gamma / jnp.sqrt(running_var + eps)).reshape(1, -1, 1, 1)
    b = (beta - running_mean * gamma / jnp.sqrt(running_var + eps)).reshape(1, -1, 1, 1)
    y = y * s + b
    return y * jax.nn.sigmoid(y)


if __name__ == "__main__":
    # Small shapes consistent with the module: Conv(c1=4, c2=8, k=3).
    N, C1, H, W = 2, 4, 16, 16
    C2, K = 8, 3

    key = jax.random.PRNGKey(0)
    kx, kw, kg, kb, km, kv = jax.random.split(key, 6)

    x = jax.random.normal(kx, (N, C1, H, W), dtype=jnp.float32)
    weight = jax.random.normal(kw, (C2, C1, K, K), dtype=jnp.float32) * 0.1
    gamma = jax.random.uniform(kg, (C2,), dtype=jnp.float32, minval=0.5, maxval=1.5)
    beta = jax.random.normal(kb, (C2,), dtype=jnp.float32) * 0.1
    running_mean = jax.random.normal(km, (C2,), dtype=jnp.float32) * 0.1
    running_var = jax.random.uniform(kv, (C2,), dtype=jnp.float32, minval=0.5, maxval=1.5)

    # bf16 operands + bf16 output with f32 accumulation -> loosened tolerance.
    TOL = dict(atol=3e-2, rtol=3e-2)

    # stride=1, dilation=1
    out = conv_bn_silu(x, weight, gamma, beta, running_mean, running_var)
    out = jax.block_until_ready(out)
    ref = _reference(x, weight, gamma, beta, running_mean, running_var)
    assert out.shape == (N, C2, H, W)
    assert jnp.allclose(out.astype(jnp.float32), ref, **TOL), "mismatch (s=1,d=1)"

    # stride=2
    out_s2 = conv_bn_silu(x, weight, gamma, beta, running_mean, running_var,
                          stride=2)
    out_s2 = jax.block_until_ready(out_s2)
    ref_s2 = _reference(x, weight, gamma, beta, running_mean, running_var,
                        stride=2)
    assert out_s2.shape == ref_s2.shape == (N, C2, H // 2, W // 2)
    assert jnp.allclose(out_s2.astype(jnp.float32), ref_s2, **TOL), "mismatch (s=2)"

    # dilation=2
    out_d2 = conv_bn_silu(x, weight, gamma, beta, running_mean, running_var,
                          dilation=2)
    out_d2 = jax.block_until_ready(out_d2)
    ref_d2 = _reference(x, weight, gamma, beta, running_mean, running_var,
                        dilation=2)
    assert out_d2.shape == ref_d2.shape == (N, C2, H, W)
    assert jnp.allclose(out_d2.astype(jnp.float32), ref_d2, **TOL), "mismatch (d=2)"

    print("KERNEL_OK")
</pallas_src>

<mosaic_0001>
module attributes {stable_mosaic.version = 11 : i64} {
  func.func @_ws_matmul_bn_silu_kernel(%arg0: i32, %arg1: memref<512x128xbf16, #tpu.memory_space<vmem>>, %arg2: memref<128x128xbf16, #tpu.memory_space<vmem>>, %arg3: memref<1x128xf32, #tpu.memory_space<vmem>>, %arg4: memref<1x128xf32, #tpu.memory_space<vmem>>, %arg5: memref<512x128xbf16, #tpu.memory_space<vmem>>) attributes {dimension_semantics = [#tpu.dimension_semantics<parallel>], iteration_bounds = array<i64: 1>, scalar_prefetch = 0 : i64, scratch_operands = 0 : i64, tpu.core_type = #tpu.core_type<tc>, window_params = [{transform_indices = @transform_0, window_bounds = array<i64: 512, 128>}, {pipeline_mode = #tpu.pipeline_mode<synchronous>, transform_indices = @transform_1, window_bounds = array<i64: 128, 128>}, {pipeline_mode = #tpu.pipeline_mode<synchronous>, transform_indices = @transform_2, window_bounds = array<i64: 1, 128>}, {pipeline_mode = #tpu.pipeline_mode<synchronous>, transform_indices = @transform_3, window_bounds = array<i64: 1, 128>}, {transform_indices = @transform_4, window_bounds = array<i64: 512, 128>}]} {
    %c0 = arith.constant 0 : index
    %c0_0 = arith.constant 0 : index
    %0 = vector.load %arg1[%c0, %c0_0] : memref<512x128xbf16, #tpu.memory_space<vmem>>, vector<512x128xbf16>
    %c0_1 = arith.constant 0 : index
    %c0_2 = arith.constant 0 : index
    %1 = vector.load %arg2[%c0_1, %c0_2] : memref<128x128xbf16, #tpu.memory_space<vmem>>, vector<128x128xbf16>
    %cst = arith.constant dense<0.000000e+00> : vector<512x128xf32>
    %2 = tpu.matmul %0, %1, %cst {dimension_numbers = #tpu.dot_dimension_numbers<[1], [0], [0], [1], [0, 0, 1, 1], [], []>} : vector<512x128xbf16>, vector<128x128xbf16>, vector<512x128xf32> -> vector<512x128xf32>
    %c0_3 = arith.constant 0 : index
    %c0_4 = arith.constant 0 : index
    %3 = vector.load %arg3[%c0_3, %c0_4] : memref<1x128xf32, #tpu.memory_space<vmem>>, vector<1x128xf32>
    %4 = vector.broadcast %3 : vector<1x128xf32> to vector<512x128xf32>
    %5 = arith.mulf %2, %4 : vector<512x128xf32>
    %c0_5 = arith.constant 0 : index
    %c0_6 = arith.constant 0 : index
    %6 = vector.load %arg4[%c0_5, %c0_6] : memref<1x128xf32, #tpu.memory_space<vmem>>, vector<1x128xf32>
    %7 = vector.broadcast %6 : vector<1x128xf32> to vector<512x128xf32>
    %8 = arith.addf %5, %7 : vector<512x128xf32>
    %9 = arith.negf %8 : vector<512x128xf32>
    %10 = math.exp %9 : vector<512x128xf32>
    %cst_7 = arith.constant 1.000000e+00 : f32
    %11 = vector.broadcast %cst_7 : f32 to vector<512x128xf32>
    %12 = arith.addf %11, %10 : vector<512x128xf32>
    %13 = arith.divf %11, %12 : vector<512x128xf32>
    %14 = arith.mulf %8, %13 : vector<512x128xf32>
    %15 = arith.truncf %14 : vector<512x128xf32> to vector<512x128xbf16>
    %c0_8 = arith.constant 0 : index
    %c0_9 = arith.constant 0 : index
    %16 = vector.load %arg5[%c0_8, %c0_9] : memref<512x128xbf16, #tpu.memory_space<vmem>>, vector<512x128xbf16>
    tpu.vector_store %arg5[%c0_8, %c0_9], %15 {strides = array<i32>} : memref<512x128xbf16, #tpu.memory_space<vmem>>, vector<512x128xbf16>,
    return
  }
  func.func @transform_0(%arg0: i32) -> (i32, i32) {
    %c0_i32 = arith.constant 0 : i32
    %c0_i32_0 = arith.constant 0 : i32
    return %arg0, %c0_i32 : i32, i32
  }
  func.func @transform_1(%arg0: i32) -> (i32, i32) {
    %c0_i32 = arith.constant 0 : i32
    %c0_i32_0 = arith.constant 0 : i32
    %c0_i32_1 = arith.constant 0 : i32
    return %c0_i32, %c0_i32_0 : i32, i32
  }
  func.func @transform_2(%arg0: i32) -> (i32, i32) {
    %c0_i32 = arith.constant 0 : i32
    %c0_i32_0 = arith.constant 0 : i32
    %c0_i32_1 = arith.constant 0 : i32
    return %c0_i32, %c0_i32_0 : i32, i32
  }
  func.func @transform_3(%arg0: i32) -> (i32, i32) {
    %c0_i32 = arith.constant 0 : i32
    %c0_i32_0 = arith.constant 0 : i32
    %c0_i32_1 = arith.constant 0 : i32
    return %c0_i32, %c0_i32_0 : i32, i32
  }
  func.func @transform_4(%arg0: i32) -> (i32, i32) {
    %c0_i32 = arith.constant 0 : i32
    %c0_i32_0 = arith.constant 0 : i32
    return %arg0, %c0_i32 : i32, i32
  }
}

</mosaic_0001>

<bundles_post_ra>
// kernel: tpu_custom_call.1
= control target key start
LH: loop header
LB: loop body
LE: loop exit
PB: predicated region body
PF: predicated region fallthrough
CT: control target
= control target key end

     0   :  { %9 = vsyncpa [#allocation3], 0  ;;  %s3122_s0 = inlined_call_operand.hbm [shape: bf16[512,128], index: 0, kind: input, shape index: {}]   ;;  %s3123_s1 = inlined_call_operand.hbm [shape: bf16[128,128], index: 1, kind: input, shape index: {}]   ;;  %s3124_s2 = inlined_call_operand.vmem [shape: f32[1,128], index: 2, kind: input, shape index: {}]   ;;  %s3125_s3 = inlined_call_operand.vmem [shape: f32[1,128], index: 3, kind: input, shape index: {}]   ;;  %s3126_s4 = inlined_call_operand.hbm [shape: bf16[512,128], index: 4, kind: output, shape index: {}]  }
   0x1   :  { %10 = vsyncpa [#allocation6], 0 }
   0x2   :  { %11 = vsyncpa [#allocation4], 0  ;;  %s2520_s15 = smov [#allocation2]   ;;  %s2448_s19 = scalar_lea.hbm %s3122_s0, 4096 }
   0x3   :  { %s17_s16 = sshll.u32 %s2520_s15, 4  ;;  %p2449_p0 = scmp.ne.s32.totalorder %s3122_s0, %s2448_s19  ;;  %s18_s16 = int_to_ptr.vmem [resolvable:$true] %s17_s16 }
   0x4   :  { %p2452_p1 = scmp.lt.u32.totalorder %s2448_s19, %s3122_s0 }
   0x6   :  { %p2454_p2 = pnand %p2452_p1, %p2449_p0 }
   0x8   :  { %2457 = shalt.err (!%p2454_p2)
}
   0x9   :  { %s2458_s24 = scalar_lea.vmem %s18_s16, 4096  ;;  %p2463_p4 = scmp.lt.s32.totalorder %s18_s16, %s18_s16 }
   0xa   :  { %p2459_p3 = scmp.ne.s32.totalorder %s18_s16, %s2458_s24  ;;  %p2464_p5 = scmp.lt.s32.totalorder %s2458_s24, %s2458_s24 }
   0xc   :  { %p2465_p6 = por %p2464_p5, %p2463_p4 }
   0xe   :  { %p2466_p7 = pnand %p2465_p6, %p2459_p3 }
  0x10   :  { %2469 = shalt.err (!%p2466_p7)
}
  0x11   :  { %s2521_s25 = smov 64   ;;  %s2522_s26 = smov 4  }
  0x12   :  { %23 = dma.hbm_to_vmem [thread:$0]  %s3122_s0, 4096, %s18_s16, [#allocation3], %s2521_s25, %s2521_s25, %s2522_s26  }
  0x13   :  { %s2523_s29 = smov [#allocation5]   ;;  %s2470_s7 = scalar_lea.hbm %s3123_s1, 1024 }
  0x14   :  { %s29_s30 = sshll.u32 %s2523_s29, 4  ;;  %p2471_p8 = scmp.ne.s32.totalorder %s3123_s1, %s2470_s7  ;;  %s30_s30 = int_to_ptr.vmem [resolvable:$true] %s29_s30 }
  0x15   :  { %p2474_p9 = scmp.lt.u32.totalorder %s2470_s7, %s3123_s1 }
  0x17   :  { %p2476_p10 = pnand %p2474_p9, %p2471_p8 }
  0x19   :  { %2479 = shalt.err (!%p2476_p10)
}
  0x1a   :  { %s2480_s12 = scalar_lea.vmem %s30_s30, 1024  ;;  %p2485_p12 = scmp.lt.s32.totalorder %s30_s30, %s30_s30 }
  0x1b   :  { %p2481_p11 = scmp.ne.s32.totalorder %s30_s30, %s2480_s12  ;;  %p2486_p13 = scmp.lt.s32.totalorder %s2480_s12, %s2480_s12 }
  0x1d   :  { %p2487_p0 = por %p2486_p13, %p2485_p12 }
  0x1f   :  { %p2488_p1 = pnand %p2487_p0, %p2481_p11 }
  0x21   :  { %2491 = shalt.err (!%p2488_p1)
}
  0x22   :  { %35 = dma.hbm_to_vmem [thread:$0]  %s3123_s1, 1024, %s30_s30, [#allocation6], %s2521_s25, %s2521_s25, %s2522_s26  }
  0x23   :  { %2514 = dma.done.wait [#allocation3], 4096  }
  0x24   :  { %2515 = vsyncadd [#allocation3], 4294963200 }
  0x25   :  { %2516 = dma.done.wait [#allocation6], 1024  }
  0x26   :  { %2517 = vsyncadd [#allocation6], 4294966272  ;;  %v2150_v0 = vld [vmem:[#allocation5] sm:$0xff]   ;;  %v2151_v1 = vld [vmem:[#allocation5 + $0x8] sm:$0xff]  }
  0x27   :  { %2049 = vmatprep.subr.bf16.mxu0 %v2150_v0  ;;  %2129 = vmatprep.subr.bf16.mxu1 %v2150_v0  ;;  %v2152_v2 = vld [vmem:[#allocation5 + $0x10] sm:$0xff]   ;;  %v2153_v3 = vld [vmem:[#allocation5 + $0x18] sm:$0xff]   ;;  %v2158_v4 = vld [vmem:[#allocation2] sm:$0xff]  }
  0x28   :  { %2050 = vmatpush3.bf16.msra.mxu0 %v2150_v0  ;;  %2137 = vmatpush3.bf16.msra.mxu1 %v2150_v0  ;;  %v2159_v5 = vld [vmem:[#allocation2 + $0x80] sm:$0xff]   ;;  %v2155_v7 = vld [vmem:[#allocation5 + $0x28] sm:$0xff]   ;;  %v2156_v8 = vld [vmem:[#allocation5 + $0x30] sm:$0xff]  }
  0x29   :  { %2051 = vmatprep.subr.bf16.mxu0 %v2151_v1  ;;  %2130 = vmatprep.subr.bf16.mxu1 %v2151_v1  ;;  %v2154_v6 = vld [vmem:[#allocation5 + $0x20] sm:$0xff]   ;;  %v2157_v9 = vld [vmem:[#allocation5 + $0x38] sm:$0xff]   ;;  %v2160_v10 = vld [vmem:[#allocation2 + $0x8] sm:$0xff]  }
  0x2a   :  { %2065 = vmatprep.mubr.bf16.mxu0 %v2158_v4  ;;  %2097 = vmatprep.mubr.bf16.mxu1 %v2159_v5  ;;  %v2161_v11 = vld [vmem:[#allocation2 + $0x88] sm:$0xff]   ;;  %v2162_v12 = vld [vmem:[#allocation2 + $0x10] sm:$0xff]   ;;  %v2164_v14 = vld [vmem:[#allocation2 + $0x18] sm:$0xff]  }
  0x2b   :  { %v2163_v13 = vld [vmem:[#allocation2 + $0x90] sm:$0xff]   ;;  %v2165_v15 = vld [vmem:[#allocation2 + $0x98] sm:$0xff]   ;;  %v2166_v16 = vld [vmem:[#allocation2 + $0x20] sm:$0xff]  }
  0x2c   :  { %2052 = vmatpush3.bf16.msra.mxu0 %v2151_v1  ;;  %2138 = vmatpush3.bf16.msra.mxu1 %v2151_v1  ;;  %v2167_v17 = vld [vmem:[#allocation2 + $0xa0] sm:$0xff]   ;;  %v2168_v18 = vld [vmem:[#allocation2 + $0x28] sm:$0xff]   ;;  %v2170_v20 = vld [vmem:[#allocation2 + $0x30] sm:$0xff]  }
  0x2d   :  { %2053 = vmatprep.subr.bf16.mxu0 %v2152_v2  ;;  %2131 = vmatprep.subr.bf16.mxu1 %v2152_v2  ;;  %v2169_v19 = vld [vmem:[#allocation2 + $0xa8] sm:$0xff]   ;;  %v2171_v21 = vld [vmem:[#allocation2 + $0xb0] sm:$0xff]   ;;  %v2172_v22 = vld [vmem:[#allocation2 + $0x38] sm:$0xff]  }
  0x2e   :  { %v2173_v23 = vld [vmem:[#allocation2 + $0xb8] sm:$0xff]   ;;  %v2174_v24 = vld [vmem:[#allocation2 + $0x40] sm:$0xff]   ;;  %v2176_v26 = vld [vmem:[#allocation2 + $0x48] sm:$0xff]  }
  0x2f   :  { %v2175_v25 = vld [vmem:[#allocation2 + $0xc0] sm:$0xff]   ;;  %v2177_v27 = vld [vmem:[#allocation2 + $0xc8] sm:$0xff]   ;;  %v2178_v28 = vld [vmem:[#allocation2 + $0x50] sm:$0xff]  }
  0x30   :  { %2054 = vmatpush3.bf16.msra.mxu0 %v2152_v2  ;;  %2139 = vmatpush3.bf16.msra.mxu1 %v2152_v2  ;;  %v2179_v29 = vld [vmem:[#allocation2 + $0xd0] sm:$0xff]   ;;  %v2180_v30 = vld [vmem:[#allocation2 + $0x58] sm:$0xff]   ;;  %v2182_v32 = vld [vmem:[#allocation2 + $0x60] sm:$0xff]  }
  0x31   :  { %2055 = vmatprep.subr.bf16.mxu0 %v2153_v3  ;;  %2132 = vmatprep.subr.bf16.mxu1 %v2153_v3  ;;  %v2181_v31 = vld [vmem:[#allocation2 + $0xd8] sm:$0xff]   ;;  %v2183_v33 = vld [vmem:[#allocation2 + $0xe0] sm:$0xff]   ;;  %v2184_v34 = vld [vmem:[#allocation2 + $0x68] sm:$0xff]  }
  0x32   :  { %v2185_v35 = vld [vmem:[#allocation2 + $0xe8] sm:$0xff]   ;;  %v2186_v36 = vld [vmem:[#allocation2 + $0x70] sm:$0xff]   ;;  %v2188_v38 = vld [vmem:[#allocation2 + $0x78] sm:$0xff]  }
  0x33   :  { %v2187_v37 = vld [vmem:[#allocation2 + $0xf0] sm:$0xff]   ;;  %v2189_v39 = vld [vmem:[#allocation2 + $0xf8] sm:$0xff]   ;;  %v2583_v40 = vld [vmem:[%s3124_s2] ss:$0 sm:$0xff] }
  0x34   :  { %2056 = vmatpush3.bf16.msra.mxu0 %v2153_v3  ;;  %2140 = vmatpush3.bf16.msra.mxu1 %v2153_v3  ;;  %v2588_v42 = vld [vmem:[%s3125_s3] ss:$0 sm:$0xff] }
  0x35   :  { %2057 = vmatprep.subr.bf16.mxu0 %v2154_v6  ;;  %2133 = vmatprep.subr.bf16.mxu1 %v2154_v6 }
  0x38   :  { %2058 = vmatpush3.bf16.msra.mxu0 %v2154_v6  ;;  %2141 = vmatpush3.bf16.msra.mxu1 %v2154_v6 }
  0x39   :  { %2059 = vmatprep.subr.bf16.mxu0 %v2155_v7  ;;  %2134 = vmatprep.subr.bf16.mxu1 %v2155_v7 }
  0x3c   :  { %2060 = vmatpush3.bf16.msra.mxu0 %v2155_v7  ;;  %2142 = vmatpush3.bf16.msra.mxu1 %v2155_v7 }
  0x3d   :  { %2061 = vmatprep.subr.bf16.mxu0 %v2156_v8  ;;  %2135 = vmatprep.subr.bf16.mxu1 %v2156_v8 }
  0x40   :  { %2062 = vmatpush3.bf16.msra.mxu0 %v2156_v8  ;;  %2143 = vmatpush3.bf16.msra.mxu1 %v2156_v8 }
  0x41   :  { %2063 = vmatprep.subr.bf16.mxu0 %v2157_v9  ;;  %2136 = vmatprep.subr.bf16.mxu1 %v2157_v9 }
  0x44   :  { %2064 = vmatpush3.bf16.msra.mxu0 %v2157_v9  ;;  %2144 = vmatpush3.bf16.msra.mxu1 %v2157_v9 }
  0x47   :  { %2066 = vmatmul.mubr.bf16.vlgmr.msra.gmra.mrb[0].mxu0 %v2160_v10  ;;  %2098 = vmatmul.mubr.bf16.vlgmr.msra.gmra.mrb[0].mxu1 %v2161_v11 }
  0x48   :  { %2069 = vmatprep.mubr.bf16.mxu0 %v2162_v12  ;;  %2101 = vmatprep.mubr.bf16.mxu1 %v2163_v13 }
  0x4f   :  { %2070 = vmatmul.mubr.bf16.gmra.mrb[4].mxu0 %v2164_v14  ;;  %2102 = vmatmul.mubr.bf16.gmra.mrb[4].mxu1 %v2165_v15 }
  0x50   :  { %2073 = vmatprep.mubr.bf16.mxu0 %v2166_v16  ;;  %2105 = vmatprep.mubr.bf16.mxu1 %v2167_v17 }
  0x57   :  { %2074 = vmatmul.mubr.bf16.gmra.mrb[8].mxu0 %v2168_v18  ;;  %2106 = vmatmul.mubr.bf16.gmra.mrb[8].mxu1 %v2169_v19 }
  0x58   :  { %2077 = vmatprep.mubr.bf16.mxu0 %v2170_v20  ;;  %2109 = vmatprep.mubr.bf16.mxu1 %v2171_v21 }
  0x5f   :  { %2078 = vmatmul.mubr.bf16.gmra.mrb[12].mxu0 %v2172_v22  ;;  %2110 = vmatmul.mubr.bf16.gmra.mrb[12].mxu1 %v2173_v23 }
  0x60   :  { %2081 = vmatprep.mubr.bf16.mxu0 %v2174_v24  ;;  %2113 = vmatprep.mubr.bf16.mxu1 %v2175_v25 }
  0x67   :  { %2082 = vmatmul.mubr.bf16.gmra.mrb[16].mxu0 %v2176_v26  ;;  %2114 = vmatmul.mubr.bf16.gmra.mrb[16].mxu1 %v2177_v27 }
  0x68   :  { %2085 = vmatprep.mubr.bf16.mxu0 %v2178_v28  ;;  %2117 = vmatprep.mubr.bf16.mxu1 %v2179_v29 }
  0x6f   :  { %2086 = vmatmul.mubr.bf16.gmra.mrb[20].mxu0 %v2180_v30  ;;  %2118 = vmatmul.mubr.bf16.gmra.mrb[20].mxu1 %v2181_v31 }
  0x70   :  { %2089 = vmatprep.mubr.bf16.mxu0 %v2182_v32  ;;  %2121 = vmatprep.mubr.bf16.mxu1 %v2183_v33 }
  0x77   :  { %2090 = vmatmul.mubr.bf16.gmra.mrb[24].mxu0 %v2184_v34  ;;  %2122 = vmatmul.mubr.bf16.gmra.mrb[24].mxu1 %v2185_v35 }
  0x78   :  { %2093 = vmatprep.mubr.bf16.mxu0 %v2186_v36  ;;  %2125 = vmatprep.mubr.bf16.mxu1 %v2187_v37 }
  0x7f   :  { %2094 = vmatmul.mubr.bf16.gmra.mrb[28].mxu0 %v2188_v38  ;;  %2126 = vmatmul.mubr.bf16.gmra.mrb[28].mxu1 %v2189_v39 }
 0x11a   :  { %v2067_v41 = vpop.f32.mrb[0].mxu0  ;;  %v2099_v43 = vpop.f32.mrb[0].mxu1 }
 0x11b   :  { %v665_v44 = vmul.f32 %v2067_v41, %v2583_v40  ;;  %v697_v45 = vmul.f32 %v2099_v43, %v2583_v40  ;;  %v401_v46 = vpop.f32.mrb[1].mxu0  ;;  %v529_v47 = vpop.f32.mrb[1].mxu1 }
 0x11c   :  { %v663_v48 = vmul.f32 %v2583_v40, %v401_v46  ;;  %v695_v49 = vmul.f32 %v2583_v40, %v529_v47  ;;  %v2068_v50 = vpop.f32.mrb[2].mxu0  ;;  %v2100_v51 = vpop.f32.mrb[2].mxu1 }
 0x11d   :  { %v2595_v52 = vadd.f32 %v2588_v42, %v665_v44  ;;  %v2598_v53 = vadd.f32 %v2588_v42, %v697_v45  ;;  %v666_v54 = vmul.f32 %v2068_v50, %v2583_v40  ;;  %v698_v55 = vmul.f32 %v2100_v51, %v2583_v40  ;;  %v404_v56 = vpop.f32.mrb[3].mxu0  ;;  %v532_v57 = vpop.f32.mrb[3].mxu1 }
 0x11e   :  { %v2603_v58 = vadd.f32 %v2588_v42, %v663_v48  ;;  %v2606_v59 = vadd.f32 %v2588_v42, %v695_v49  ;;  %v664_v60 = vmul.f32 %v2583_v40, %v404_v56  ;;  %v696_v61 = vmul.f32 %v2583_v40, %v532_v57 }
 0x11f   :  { %v1628_v62 = vmul.f32 -1.442695, %v2595_v52  ;;  %v1660_v63 = vmul.f32 -1.442695, %v2598_v53  ;;  %v2613_v0 = vadd.f32 %v2588_v42, %v666_v54  ;;  %v2616_v1 = vadd.f32 %v2588_v42, %v698_v55 }
 0x120   :  { %v1626_v2 = vmul.f32 -1.442695, %v2603_v58  ;;  %v1658_v3 = vmul.f32 -1.442695, %v2606_v59  ;;  %v2621_v4 = vadd.f32 %v2588_v42, %v664_v60  ;;  %v2624_v5 = vadd.f32 %v2588_v42, %v696_v61 }
 0x121   :  { %2190 = vpow2.f32 %v1628_v62  ;;  %v1629_v6 = vmul.f32 -1.442695, %v2613_v0  ;;  %v1661_v7 = vmul.f32 -1.442695, %v2616_v1 }
 0x122   :  { %2192 = vpow2.f32 %v1660_v63  ;;  %v2071_v8 = vpop.f32.mrb[4].mxu0  ;;  %v2103_v9 = vpop.f32.mrb[4].mxu1  ;;  %v1627_v10 = vmul.f32 -1.442695, %v2621_v4  ;;  %v1659_v15 = vmul.f32 -1.442695, %v2624_v5 }
 0x123   :  { %2194 = vpow2.f32 %v1626_v2  ;;  %v669_v11 = vmul.f32 %v2071_v8, %v2583_v40  ;;  %v701_v12 = vmul.f32 %v2103_v9, %v2583_v40  ;;  %v417_v13 = vpop.f32.mrb[5].mxu0  ;;  %v545_v14 = vpop.f32.mrb[5].mxu1 }
 0x124   :  { %2196 = vpow2.f32 %v1658_v3  ;;  %v667_v16 = vmul.f32 %v2583_v40, %v417_v13  ;;  %v699_v17 = vmul.f32 %v2583_v40, %v545_v14  ;;  %v2072_v18 = vpop.f32.mrb[6].mxu0  ;;  %v2104_v19 = vpop.f32.mrb[6].mxu1 }
 0x125   :  { %2198 = vpow2.f32 %v1629_v6  ;;  %v2635_v20 = vadd.f32 %v2588_v42, %v669_v11  ;;  %v2638_v21 = vadd.f32 %v2588_v42, %v701_v12  ;;  %v670_v22 = vmul.f32 %v2072_v18, %v2583_v40  ;;  %v420_v23 = vpop.f32.mrb[7].mxu0  ;;  %v548_v24 = vpop.f32.mrb[7].mxu1 }
 0x126   :  { %2200 = vpow2.f32 %v1661_v7  ;;  %v2642_v25 = vadd.f32 %v2588_v42, %v667_v16  ;;  %v2645_v26 = vadd.f32 %v2588_v42, %v699_v17  ;;  %v702_v27 = vmul.f32 %v2104_v19, %v2583_v40 }
 0x127   :  { %2202 = vpow2.f32 %v1627_v10  ;;  %v1632_v28 = vmul.f32 -1.442695, %v2635_v20  ;;  %v1664_v29 = vmul.f32 -1.442695, %v2638_v21  ;;  %v2651_v30 = vadd.f32 %v2588_v42, %v670_v22 }
 0x128   :  { %2204 = vpow2.f32 %v1659_v15  ;;  %v1630_v31 = vmul.f32 -1.442695, %v2642_v25  ;;  %v1662_v32 = vmul.f32 -1.442695, %v2645_v26  ;;  %v668_v34 = vmul.f32 %v2583_v40, %v420_v23 }
 0x129   :  { %2206 = vpow2.f32 %v1632_v28  ;;  %v1633_v33 = vmul.f32 -1.442695, %v2651_v30  ;;  %v2658_v38 = vadd.f32 %v2588_v42, %v702_v27  ;;  %v700_v45 = vmul.f32 %v2583_v40, %v548_v24 }
 0x12a   :  { %2208 = vpow2.f32 %v1664_v29  ;;  %v2075_v35 = vpop.f32.mrb[8].mxu0  ;;  %v2107_v36 = vpop.f32.mrb[8].mxu1  ;;  %v2662_v55 = vadd.f32 %v2588_v42, %v668_v34 }
 0x12b   :  { %v2191_v37 = vpop.eup %2190  ;;  %2210 = vpow2.f32 %v1630_v31  ;;  %v433_v39 = vpop.f32.mrb[9].mxu0  ;;  %v2665_v61 = vmul.f32 -1.442695, %v2658_v38  ;;  %v2668_v2 = vadd.f32 %v2588_v42, %v700_v45  ;;  %v673_v3 = vmul.f32 %v2075_v35, %v2583_v40 }
 0x12c   :  { %v561_v41 = vpop.f32.mrb[9].mxu1  ;;  %v2193_v43 = vpop.eup %2192  ;;  %v992_v44 = vadd.f32 1.0, %v2191_v37  ;;  %2212 = vpow2.f32 %v1662_v32  ;;  %v705_v8 = vmul.f32 %v2107_v36, %v2583_v40  ;;  %v671_v9 = vmul.f32 %v2583_v40, %v433_v39 }
 0x12d   :  { %v2076_v46 = vpop.f32.mrb[10].mxu0  ;;  %v2108_v47 = vpop.f32.mrb[10].mxu1  ;;  %v1024_v49 = vadd.f32 1.0, %v2193_v43  ;;  %2214 = vpow2.f32 %v1633_v33  ;;  %v1631_v12 = vmul.f32 -1.442695, %v2662_v55  ;;  %v703_v13 = vmul.f32 %v2583_v40, %v561_v41 }
 0x12e   :  { %v2195_v48 = vpop.eup %2194  ;;  %v436_v50 = vpop.f32.mrb[11].mxu0  ;;  %2216 = vrcp.f32 %v992_v44  ;;  %v674_v18 = vmul.f32 %v2076_v46, %v2583_v40  ;;  %v706_v19 = vmul.f32 %v2108_v47, %v2583_v40  ;;  %v2680_v28 = vadd.f32 %v2588_v42, %v673_v3 }
 0x12f   :  { %v2197_v51 = vpop.eup %2196  ;;  %v990_v54 = vadd.f32 1.0, %v2195_v48  ;;  %v564_v56 = vpop.f32.mrb[11].mxu1  ;;  %2218 = vrcp.f32 %v1024_v49  ;;  %v672_v29 = vmul.f32 %v2583_v40, %v436_v50  ;;  %v2688_v35 = vadd.f32 %v2588_v42, %v705_v8 }
 0x130   :  { %v2199_v57 = vpop.eup %2198  ;;  %v1022_v60 = vadd.f32 1.0, %v2197_v51  ;;  %v2691_v36 = vadd.f32 %v2588_v42, %v671_v9  ;;  %v1663_v44 = vmul.f32 -1.442695, %v2668_v2  ;;  %v2699_v45 = vadd.f32 %v2588_v42, %v703_v13 }
 0x131   :  { %v2201_v62 = vpop.eup %2200  ;;  %2220 = vrcp.f32 %v990_v54  ;;  %v993_v63 = vadd.f32 1.0, %v2199_v57  ;;  %v2702_v48 = vadd.f32 %v2588_v42, %v674_v18  ;;  %v2705_v49 = vadd.f32 %v2588_v42, %v706_v19 }
 0x132   :  { %v2203_v6 = vpop.eup %2202  ;;  %2222 = vrcp.f32 %v1022_v60  ;;  %v1025_v7 = vadd.f32 1.0, %v2201_v62  ;;  %v2079_v14 = vpop.f32.mrb[12].mxu0  ;;  %v2708_v54 = vadd.f32 %v2588_v42, %v672_v29  ;;  %v704_v57 = vmul.f32 %v2583_v40, %v564_v56 }
 0x133   :  { %v2205_v10 = vpop.eup %2204  ;;  %2224 = vrcp.f32 %v993_v63  ;;  %v991_v11 = vadd.f32 1.0, %v2203_v6  ;;  %v2111_v15 = vpop.f32.mrb[12].mxu1  ;;  %v1636_v62 = vmul.f32 -1.442695, %v2680_v28  ;;  %v1668_v63 = vmul.f32 -1.442695, %v2688_v35 }
 0x134   :  { %v2207_v16 = vpop.eup %2206  ;;  %2226 = vrcp.f32 %v1025_v7  ;;  %v1023_v17 = vadd.f32 1.0, %v2205_v10  ;;  %v449_v22 = vpop.f32.mrb[13].mxu0  ;;  %v1634_v3 = vmul.f32 -1.442695, %v2691_v36  ;;  %v1666_v7 = vmul.f32 -1.442695, %v2699_v45 }
 0x135   :  { %v2677_v23 = vpop.f32.mrb[13].mxu1  ;;  %v2209_v24 = vpop.eup %2208  ;;  %2228 = vrcp.f32 %v991_v11  ;;  %v996_v27 = vadd.f32 1.0, %v2207_v16  ;;  %v677_v8 = vmul.f32 %v2079_v14, %v2583_v40  ;;  %v709_v9 = vmul.f32 %v2111_v15, %v2583_v40 }
 0x136   :  { %v2683_v31 = vpop.f32.mrb[14].mxu0  ;;  %v2685_v32 = vpop.f32.mrb[14].mxu1  ;;  %2230 = vrcp.f32 %v1023_v17  ;;  %v1028_v34 = vadd.f32 1.0, %v2209_v24  ;;  %v1637_v13 = vmul.f32 -1.442695, %v2702_v48  ;;  %v2731_v24 = vadd.f32 %v2588_v42, %v704_v57 }
 0x137   :  { %v2211_v33 = vpop.eup %2210  ;;  %v2693_v37 = vpop.f32.mrb[15].mxu0  ;;  %2232 = vrcp.f32 %v996_v27  ;;  %v1669_v16 = vmul.f32 -1.442695, %v2705_v49  ;;  %v1635_v15 = vmul.f32 -1.442695, %v2708_v54 }
 0x138   :  { %v2695_v39 = vpop.f32.mrb[15].mxu1  ;;  %v2213_v41 = vpop.eup %2212  ;;  %v994_v43 = vadd.f32 1.0, %v2211_v33  ;;  %2234 = vrcp.f32 %v1028_v34 }
 0x139   :  { %v2215_v46 = vpop.eup %2214  ;;  %v1026_v47 = vadd.f32 1.0, %v2213_v41  ;;  %v675_v41 = vmul.f32 %v2583_v40, %v449_v22 }
 0x13a   :  { %v2217_v50 = vpop.eup %2216  ;;  %2236 = vrcp.f32 %v994_v43  ;;  %v997_v51 = vadd.f32 1.0, %v2215_v46  ;;  %v2717_v10 = vpop.f32.mrb[16].mxu0 }
 0x13b   :  { %v2219_v60 = vpop.eup %2218  ;;  %2238 = vrcp.f32 %v1026_v47  ;;  %v2719_v11 = vpop.f32.mrb[16].mxu1  ;;  %v1184_v14 = vmul.f32 %v2217_v50, %v2595_v52  ;;  %v2746_v47 = vadd.f32 %v2588_v42, %v677_v8  ;;  %v2749_v50 = vadd.f32 %v2588_v42, %v709_v9 }
 0x13c   :  { %v2221_v6 = vpop.eup %2220  ;;  %2240 = vrcp.f32 %v997_v51  ;;  %v2724_v17 = vpop.f32.mrb[17].mxu0  ;;  %v1216_v33 = vmul.f32 %v2219_v60, %v2598_v53  ;;  %v1667_v9 = vmul.f32 -1.442695, %v2731_v24 }
 0x13d   :  { %v2223_v56 = vpop.eup %2222  ;;  %2242 = vpow2.f32 %v2665_v61  ;;  %v2726_v18 = vpop.f32.mrb[17].mxu1 }
 0x13e   :  { %v2225_v19 = vpop.eup %2224  ;;  %2244 = vpow2.f32 %v1631_v12  ;;  %v2733_v27 = vpop.f32.mrb[18].mxu0  ;;  %v1214_v57 = vmul.f32 %v2223_v56, %v2606_v59 }
 0x13f   :  { %v2735_v61 = vpop.f32.mrb[18].mxu1  ;;  %v2227_v29 = vpop.eup %2226  ;;  %v1185_v34 = vmul.f32 %v2225_v19, %v2613_v0  ;;  %2246 = vpow2.f32 %v1663_v44  ;;  %v1182_v0 = vmul.f32 %v2221_v6, %v2603_v58 }
 0x140   :  { %v2740_v43 = vpop.f32.mrb[19].mxu0  ;;  %v2742_v52 = vpop.f32.mrb[19].mxu1  ;;  %v1217_v46 = vmul.f32 %v2227_v29, %v2616_v1  ;;  %2248 = vpow2.f32 %v1636_v62 }
 0x141   :  { %v2229_v12 = vpop.eup %2228  ;;  %v1826_v44 = vpack.c.bf16 %v1185_v34, %v1184_v14  ;;  %2250 = vpow2.f32 %v1668_v63  ;;  %v707_v63 = vmul.f32 %v2583_v40, %v2677_v23  ;;  %v2771_v14 = vadd.f32 %v2588_v42, %v675_v41 }
 0x142   :  { %v2231_v53 = vpop.eup %2230  ;;  %v1183_v22 = vmul.f32 %v2229_v12, %v2621_v4  ;;  %v1906_v60 = vpack.c.bf16 %v1217_v46, %v1216_v33  ;;  %2252 = vpow2.f32 %v1634_v3  ;;  %v1640_v4 = vmul.f32 -1.442695, %v2746_v47  ;;  %v2759_v59 = vpop.f32.mrb[20].mxu0 }
 0x143   :  { %v2233_v51 = vpop.eup %2232  ;;  %v1215_v1 = vmul.f32 %v2231_v53, %v2624_v5  ;;  %1978 = vst [vmem:[#allocation7 + $0x8] sm:$0xff] %v1826_v44   ;;  %2254 = vpow2.f32 %v1666_v7  ;;  %v2761_v6 = vpop.f32.mrb[20].mxu1  ;;  %v1672_v3 = vmul.f32 -1.442695, %v2749_v50  ;;  %v678_v23 = vmul.f32 %v2683_v31, %v2583_v40 }
 0x144   :  { %v2235_v62 = vpop.eup %2234  ;;  %v1821_v8 = vpack.c.bf16 %v1183_v22, %v1182_v0  ;;  %1994 = vst [vmem:[#allocation7 + $0x88] sm:$0xff] %v1906_v60   ;;  %2256 = vpow2.f32 %v1637_v13  ;;  %v2766_v7 = vpop.f32.mrb[21].mxu0  ;;  %v1188_v34 = vmul.f32 %v2233_v51, %v2635_v20  ;;  %v710_v46 = vmul.f32 %v2685_v32, %v2583_v40 }
 0x145   :  { %v2237_v19 = vpop.eup %2236  ;;  %v1901_v58 = vpack.c.bf16 %v1215_v1, %v1214_v57  ;;  %2258 = vpow2.f32 %v1669_v16  ;;  %v2768_v56 = vpop.f32.mrb[21].mxu1  ;;  %v2788_v31 = vadd.f32 %v2588_v42, %v707_v63  ;;  %v2791_v51 = vadd.f32 %v2588_v42, %v678_v23 }
 0x146   :  { %v2763_v5 = vpop.eup %2238  ;;  %1822 = vst [vmem:[#allocation7] sm:$0xff] %v1821_v8   ;;  %2260 = vpow2.f32 %v1635_v15  ;;  %v2775_v29 = vpop.f32.mrb[22].mxu0  ;;  %v2794_v1 = vmul.f32 -1.442695, %v2771_v14  ;;  %v2797_v8 = vadd.f32 %v2588_v42, %v710_v46  ;;  %v676_v63 = vmul.f32 %v2583_v40, %v2693_v37 }
 0x147   :  { %v2241_v13 = vpop.eup %2240  ;;  %1993 = vst [vmem:[#allocation7 + $0x80] sm:$0xff] %v1901_v58   ;;  %v2777_v33 = vpop.f32.mrb[22].mxu1  ;;  %2262 = vpow2.f32 %v1667_v9  ;;  %v2818_v37 = vmul.f32 %v2237_v19, %v2642_v25 }
 0x148   :  { %v2243_v16 = vpop.eup %2242  ;;  %v1189_v12 = vmul.f32 %v2241_v13, %v2651_v30  ;;  %v2783_v15 = vpop.f32.mrb[23].mxu0  ;;  %2264 = vpow2.f32 %v1640_v4  ;;  %v2800_v4 = vmul.f32 -1.442695, %v2788_v31 }
 0x149   :  { %v2785_v41 = vpop.f32.mrb[23].mxu1  ;;  %v2245_v53 = vpop.eup %2244  ;;  %v1029_v0 = vadd.f32 1.0, %v2243_v16  ;;  %2266 = vpow2.f32 %v1672_v3  ;;  %v2809_v16 = vmul.f32 %v2235_v62, %v2638_v21 }
 0x14a   :  { %v2247_v44 = vpop.eup %2246  ;;  %v1836_v22 = vpack.c.bf16 %v1189_v12, %v1188_v34  ;;  %v995_v57 = vadd.f32 1.0, %v2245_v53  ;;  %v2804_v3 = vpop.f32.mrb[24].mxu0  ;;  %v708_v12 = vmul.f32 %v2583_v40, %v2695_v39 }
 0x14b   :  { %v2249_v20 = vpop.eup %2248  ;;  %2268 = vrcp.f32 %v1029_v0  ;;  %v1027_v30 = vadd.f32 1.0, %v2247_v44  ;;  %v2806_v13 = vpop.f32.mrb[24].mxu1 }
 0x14c   :  { %v2251_v32 = vpop.eup %2250  ;;  %1980 = vst [vmem:[#allocation7 + $0x18] sm:$0xff] %v1836_v22   ;;  %2270 = vrcp.f32 %v995_v57  ;;  %v1000_v60 = vadd.f32 1.0, %v2249_v20  ;;  %v2813_v46 = vpop.f32.mrb[25].mxu0  ;;  %v2821_v22 = vmul.f32 -1.442695, %v2791_v51 }
 0x14d   :  { %v2253_v9 = vpop.eup %2252  ;;  %2272 = vrcp.f32 %v1027_v30  ;;  %v1032_v58 = vadd.f32 1.0, %v2251_v32  ;;  %v2815_v53 = vpop.f32.mrb[25].mxu1  ;;  %v2828_v20 = vmul.f32 -1.442695, %v2797_v8  ;;  %v681_v30 = vmul.f32 %v2717_v10, %v2583_v40 }
 0x14e   :  { %v2255_v23 = vpop.eup %2254  ;;  %2274 = vrcp.f32 %v1000_v60  ;;  %v998_v34 = vadd.f32 1.0, %v2253_v9  ;;  %v2823_v21 = vpop.f32.mrb[26].mxu0  ;;  %v2838_v60 = vmul.f32 %v2763_v5, %v2645_v26  ;;  %v713_v10 = vmul.f32 %v2719_v11, %v2583_v40 }
 0x14f   :  { %v2257_v0 = vpop.eup %2256  ;;  %2276 = vrcp.f32 %v1032_v58  ;;  %v1030_v44 = vadd.f32 1.0, %v2255_v23  ;;  %v2825_v62 = vpop.f32.mrb[26].mxu1  ;;  %v2841_v58 = vadd.f32 %v2588_v42, %v676_v63  ;;  %v679_v26 = vmul.f32 %v2583_v40, %v2724_v17 }
 0x150   :  { %v2259_v57 = vpop.eup %2258  ;;  %2278 = vrcp.f32 %v998_v34  ;;  %v1001_v39 = vadd.f32 1.0, %v2257_v0  ;;  %v2832_v25 = vpop.f32.mrb[27].mxu0  ;;  %v2844_v0 = vadd.f32 %v2588_v42, %v708_v12  ;;  %v711_v5 = vmul.f32 %v2583_v40, %v2726_v18 }
 0x151   :  { %3128 = vst [vmem:[#allocation11_spill] sm:$0xff] %v2832_v25  ;;  %v2834_v19 = vpop.f32.mrb[27].mxu1  ;;  %v2261_v32 = vpop.eup %2260  ;;  %2280 = vrcp.f32 %v1030_v44  ;;  %v1033_v9 = vadd.f32 1.0, %v2259_v57  ;;  %v2853_v57 = vadd.f32 %v2588_v42, %v681_v30  ;;  %v682_v12 = vmul.f32 %v2733_v27, %v2583_v40 }
 0x152   :  { %3129 = vst [vmem:[#allocation12_spill] sm:$0xff] %v2834_v19  ;;  %v2263_v23 = vpop.eup %2262  ;;  %2282 = vrcp.f32 %v1001_v39  ;;  %v999_v34 = vadd.f32 1.0, %v2261_v32  ;;  %v1639_v32 = vmul.f32 -1.442695, %v2841_v58  ;;  %v714_v17 = vmul.f32 %v2735_v61, %v2583_v40  ;;  %v2862_v18 = vpop.f32.mrb[28].mxu1 }
 0x153   :  { %v2265_v19 = vpop.eup %2264  ;;  %2284 = vrcp.f32 %v1033_v9  ;;  %v1031_v25 = vadd.f32 1.0, %v2263_v23  ;;  %v2860_v9 = vpop.f32.mrb[28].mxu0  ;;  %3130 = vst [vmem:[#allocation13_spill] sm:$0xff] %v2862_v18  ;;  %v2866_v30 = vadd.f32 %v2588_v42, %v713_v10  ;;  %v680_v27 = vmul.f32 %v2583_v40, %v2740_v43 }
 0x154   :  { %v2267_v63 = vpop.eup %2266  ;;  %2286 = vrcp.f32 %v999_v34  ;;  %v1004_v44 = vadd.f32 1.0, %v2265_v19  ;;  %v2872_v34 = vpop.f32.mrb[29].mxu1  ;;  %v2876_v18 = vadd.f32 %v2588_v42, %v679_v26 }
 0x155   :  { %v2269_v39 = vpop.eup %2268  ;;  %2288 = vrcp.f32 %v1031_v25  ;;  %v1036_v11 = vadd.f32 1.0, %v2267_v63  ;;  %v2870_v25 = vpop.f32.mrb[29].mxu0 }
 0x156   :  { %v2271_v23 = vpop.eup %2270  ;;  %v1221_v19 = vmul.f32 %v2269_v39, %v2658_v38  ;;  %2290 = vrcp.f32 %v1004_v44  ;;  %3131 = vst [vmem:[#allocation14_spill] sm:$0xff] %v2870_v25  ;;  %v2879_v38 = vadd.f32 %v2588_v42, %v711_v5  ;;  %v2881_v44 = vpop.f32.mrb[30].mxu0 }
 0x157   :  { %v2273_v63 = vpop.eup %2272  ;;  %v1187_v61 = vmul.f32 %v2271_v23, %v2662_v55  ;;  %2292 = vrcp.f32 %v1036_v11  ;;  %3133 = vst [vmem:[#allocation16_spill] sm:$0xff] %v2881_v44  ;;  %v2883_v10 = vpop.f32.mrb[30].mxu1  ;;  %v2889_v55 = vadd.f32 %v2588_v42, %v682_v12  ;;  %v1644_v12 = vmul.f32 -1.442695, %v2853_v57 }
 0x158   :  { %3132 = vst [vmem:[#allocation15_spill] sm:$0xff] %v2879_v38  ;;  %3134 = vst [vmem:[#allocation17_spill] sm:$0xff] %v2883_v10  ;;  %v2275_v39 = vpop.eup %2274  ;;  %v1916_v43 = vpack.c.bf16 %v1221_v19, %v2809_v16  ;;  %v1219_v25 = vmul.f32 %v2273_v63, %v2668_v2  ;;  %2294 = vpow2.f32 %v2794_v1  ;;  %v2891_v11 = vpop.f32.mrb[31].mxu0  ;;  %v1671_v10 = vmul.f32 -1.442695, %v2844_v0 }
 0x159   :  { %3135 = vst [vmem:[#allocation18_spill] sm:$0xff] %v2891_v11  ;;  %v2893_v26 = vpop.f32.mrb[31].mxu1  ;;  %v2277_v5 = vpop.eup %2276  ;;  %v1831_v23 = vpack.c.bf16 %v1187_v61, %v2818_v37  ;;  %2296 = vpow2.f32 %v2800_v4  ;;  %v2899_v16 = vadd.f32 %v2588_v42, %v714_v17  ;;  %v2905_v19 = vadd.f32 %v2588_v42, %v680_v27 }
 0x15a   :  { %3136 = vst [vmem:[#allocation19_spill] sm:$0xff] %v2893_v26  ;;  %v2279_v2 = vpop.eup %2278  ;;  %1996 = vst [vmem:[#allocation7 + $0x98] sm:$0xff] %v1916_v43   ;;  %v1911_v1 = vpack.c.bf16 %v1219_v25, %v2838_v60  ;;  %2298 = vpow2.f32 %v2821_v22  ;;  %v1676_v4 = vmul.f32 -1.442695, %v2866_v30  ;;  %v1642_v17 = vmul.f32 -1.442695, %v2876_v18 }
 0x15b   :  { %v2281_v63 = vpop.eup %2280  ;;  %1979 = vst [vmem:[#allocation7 + $0x10] sm:$0xff] %v1831_v23   ;;  %2300 = vpow2.f32 %v2828_v20  ;;  %v1674_v60 = vmul.f32 -1.442695, %v2879_v38  ;;  %v1645_v22 = vmul.f32 -1.442695, %v2889_v55  ;;  %v1192_v61 = vmul.f32 %v2275_v39, %v2680_v28 }
 0x15c   :  { %v2283_v37 = vpop.eup %2282  ;;  %1995 = vst [vmem:[#allocation7 + $0x90] sm:$0xff] %v1911_v1   ;;  %2302 = vpow2.f32 %v1639_v32  ;;  %v1677_v43 = vmul.f32 -1.442695, %v2899_v16  ;;  %v1224_v23 = vmul.f32 %v2277_v5, %v2688_v35  ;;  %v1643_v32 = vmul.f32 -1.442695, %v2905_v19 }
 0x15d   :  { %v2285_v25 = vpop.eup %2284  ;;  %v1193_v27 = vmul.f32 %v2283_v37, %v2702_v48  ;;  %2304 = vpow2.f32 %v1671_v10  ;;  %v1190_v38 = vmul.f32 %v2279_v2, %v2691_v36  ;;  %v1222_v48 = vmul.f32 %v2281_v63, %v2699_v45 }
 0x15e   :  { %v2287_v20 = vpop.eup %2286  ;;  %v1225_v1 = vmul.f32 %v2285_v25, %v2705_v49  ;;  %2306 = vpow2.f32 %v1644_v12  ;;  %v712_v36 = vmul.f32 %v2583_v40, %v2742_v52 }
 0x15f   :  { %v2289_v26 = vpop.eup %2288  ;;  %v1846_v11 = vpack.c.bf16 %v1193_v27, %v1192_v61  ;;  %v1191_v44 = vmul.f32 %v2287_v20, %v2708_v54  ;;  %2308 = vpow2.f32 %v1676_v4  ;;  %v685_v54 = vmul.f32 %v2759_v59, %v2583_v40 }
 0x160   :  { %v2920_v28 = vpop.eup %2290  ;;  %v1926_v10 = vpack.c.bf16 %v1225_v1, %v1224_v23  ;;  %v1223_v39 = vmul.f32 %v2289_v26, %v2731_v24  ;;  %2310 = vpow2.f32 %v1642_v17  ;;  %v717_v24 = vmul.f32 %v2761_v6, %v2583_v40 }
 0x161   :  { %v2924_v35 = vpop.eup %2292  ;;  %1982 = vst [vmem:[#allocation7 + $0x28] sm:$0xff] %v1846_v11   ;;  %v1841_v49 = vpack.c.bf16 %v1191_v44, %v1190_v38  ;;  %2312 = vpow2.f32 %v1674_v60  ;;  %v683_v38 = vmul.f32 %v2583_v40, %v2766_v7  ;;  %v2935_v26 = vadd.f32 %v2588_v42, %v712_v36 }
 0x162   :  { %v2295_v5 = vpop.eup %2294  ;;  %1998 = vst [vmem:[#allocation7 + $0xa8] sm:$0xff] %v1926_v10   ;;  %v1921_v2 = vpack.c.bf16 %v1223_v39, %v1222_v48  ;;  %2314 = vpow2.f32 %v1645_v22  ;;  %v2938_v63 = vadd.f32 %v2588_v42, %v685_v54  ;;  %v715_v6 = vmul.f32 %v2583_v40, %v2768_v56 }
 0x163   :  { %v2297_v45 = vpop.eup %2296  ;;  %1981 = vst [vmem:[#allocation7 + $0x20] sm:$0xff] %v1841_v49   ;;  %v1002_v12 = vadd.f32 1.0, %v2295_v5  ;;  %2316 = vpow2.f32 %v1677_v43  ;;  %v2943_v60 = vadd.f32 %v2588_v42, %v717_v24  ;;  %v2946_v22 = vadd.f32 %v2588_v42, %v683_v38 }
 0x164   :  { %v2299_v44 = vpop.eup %2298  ;;  %1997 = vst [vmem:[#allocation7 + $0xa0] sm:$0xff] %v1921_v2   ;;  %v1034_v52 = vadd.f32 1.0, %v2297_v45  ;;  %2318 = vpow2.f32 %v1643_v32  ;;  %v686_v27 = vmul.f32 %v2775_v29, %v2583_v40  ;;  %v718_v43 = vmul.f32 %v2777_v33, %v2583_v40 }
 0x165   :  { %v2301_v11 = vpop.eup %2300  ;;  %2320 = vrcp.f32 %v1002_v12  ;;  %v1005_v59 = vadd.f32 1.0, %v2299_v44  ;;  %v1675_v23 = vmul.f32 -1.442695, %v2935_v26  ;;  %v1648_v1 = vmul.f32 -1.442695, %v2938_v63 }
 0x166   :  { %v2303_v4 = vpop.eup %2302  ;;  %2322 = vrcp.f32 %v1034_v52  ;;  %v1037_v37 = vadd.f32 1.0, %v2301_v11  ;;  %v2955_v10 = vadd.f32 %v2588_v42, %v715_v6  ;;  %v684_v39 = vmul.f32 %v2583_v40, %v2783_v15 }
 0x167   :  { %v2305_v7 = vpop.eup %2304  ;;  %2324 = vrcp.f32 %v1005_v59  ;;  %v1003_v17 = vadd.f32 1.0, %v2303_v4  ;;  %v1680_v33 = vmul.f32 -1.442695, %v2943_v60  ;;  %v1646_v36 = vmul.f32 -1.442695, %v2946_v22 }
 0x168   :  { %v2307_v25 = vpop.eup %2306  ;;  %2326 = vrcp.f32 %v1037_v37  ;;  %v1035_v61 = vadd.f32 1.0, %v2305_v7  ;;  %v2962_v2 = vadd.f32 %v2588_v42, %v686_v27  ;;  %v2965_v45 = vadd.f32 %v2588_v42, %v718_v43 }
 0x169   :  { %v2309_v20 = vpop.eup %2308  ;;  %2328 = vrcp.f32 %v1003_v17  ;;  %v1008_v56 = vadd.f32 1.0, %v2307_v25  ;;  %v716_v15 = vmul.f32 %v2583_v40, %v2785_v41  ;;  %v689_v38 = vmul.f32 %v2804_v3, %v2583_v40 }
 0x16a   :  { %v2311_v32 = vpop.eup %2310  ;;  %2330 = vrcp.f32 %v1035_v61  ;;  %v1040_v48 = vadd.f32 1.0, %v2309_v20  ;;  %v1678_v11 = vmul.f32 -1.442695, %v2955_v10  ;;  %v2973_v59 = vadd.f32 %v2588_v42, %v684_v39 }
 0x16b   :  { %v2313_v29 = vpop.eup %2312  ;;  %2332 = vrcp.f32 %v1008_v56  ;;  %v1006_v49 = vadd.f32 1.0, %v2311_v32  ;;  %v721_v6 = vmul.f32 %v2806_v13, %v2583_v40  ;;  %v687_v41 = vmul.f32 %v2583_v40, %v2813_v46 }
 0x16c   :  { %v2315_v54 = vpop.eup %2314  ;;  %2334 = vrcp.f32 %v1040_v48  ;;  %v1038_v5 = vadd.f32 1.0, %v2313_v29  ;;  %v1196_v3 = vmul.f32 %v2920_v28, %v2746_v47  ;;  %v1649_v17 = vmul.f32 -1.442695, %v2962_v2 }
 0x16d   :  { %v2317_v12 = vpop.eup %2316  ;;  %2336 = vrcp.f32 %v1006_v49  ;;  %v1009_v24 = vadd.f32 1.0, %v2315_v54  ;;  %v1681_v25 = vmul.f32 -1.442695, %v2965_v45  ;;  %v1228_v27 = vmul.f32 %v2924_v35, %v2749_v50 }
 0x16e   :  { %v2319_v44 = vpop.eup %2318  ;;  %2338 = vrcp.f32 %v1038_v5  ;;  %v1041_v52 = vadd.f32 1.0, %v2317_v12  ;;  %v2986_v43 = vadd.f32 %v2588_v42, %v716_v15  ;;  %v2989_v13 = vadd.f32 %v2588_v42, %v689_v38 }
 0x16f   :  { %v2321_v4 = vpop.eup %2320  ;;  %2340 = vrcp.f32 %v1009_v24  ;;  %v1007_v37 = vadd.f32 1.0, %v2319_v44  ;;  %v1647_v47 = vmul.f32 -1.442695, %v2973_v59  ;;  %v719_v28 = vmul.f32 %v2583_v40, %v2815_v53 }
 0x170   :  { %v2323_v7 = vpop.eup %2322  ;;  %2342 = vrcp.f32 %v1041_v52  ;;  %v2997_v50 = vadd.f32 %v2588_v42, %v721_v6  ;;  %v3000_v35 = vadd.f32 %v2588_v42, %v687_v41  ;;  %v1194_v39 = vmul.f32 %v2321_v4, %v2771_v14 }
 0x171   :  { %v2325_v61 = vpop.eup %2324  ;;  %2344 = vrcp.f32 %v1007_v37  ;;  %v1226_v53 = vmul.f32 %v2323_v7, %v2788_v31  ;;  %v1679_v5 = vmul.f32 -1.442695, %v2986_v43  ;;  %v3008_v12 = vadd.f32 %v2588_v42, %v719_v28 }
 0x172   :  { %v2327_v46 = vpop.eup %2326  ;;  %v1197_v20 = vmul.f32 %v2325_v61, %v2791_v51  ;;  %2346 = vpow2.f32 %v1675_v23  ;;  %v1650_v24 = vmul.f32 -1.442695, %v3000_v35  ;;  %v690_v15 = vmul.f32 %v2823_v21, %v2583_v40 }
 0x173   :  { %v2329_v56 = vpop.eup %2328  ;;  %v1229_v32 = vmul.f32 %v2327_v46, %v2797_v8  ;;  %2348 = vpow2.f32 %v1648_v1  ;;  %v722_v38 = vmul.f32 %v2825_v62, %v2583_v40  ;;  %v1682_v4 = vmul.f32 -1.442695, %v3008_v12 }
 0x174   :  { %v2331_v48 = vpop.eup %2330  ;;  %v1856_v51 = vpack.c.bf16 %v1197_v20, %v1196_v3  ;;  %v1195_v23 = vmul.f32 %v2329_v56, %v2841_v58  ;;  %2350 = vpow2.f32 %v1680_v33  ;;  %v1652_v33 = vmul.f32 -1.442695, %v2989_v13  ;;  %v2446_v20 = vld [vmem:[%s3124_s2] ss:$0 sm:$0xff] }
 0x175   :  { %v2333_v29 = vpop.eup %2332  ;;  %v1936_v49 = vpack.c.bf16 %v1229_v32, %v1228_v27  ;;  %v1227_v8 = vmul.f32 %v2331_v48, %v2844_v0  ;;  %2352 = vpow2.f32 %v1646_v36  ;;  %v1684_v0 = vmul.f32 -1.442695, %v2997_v50 }
 0x176   :  { %v2335_v1 = vpop.eup %2334  ;;  %1984 = vst [vmem:[#allocation7 + $0x38] sm:$0xff] %v1856_v51   ;;  %v1851_v54 = vpack.c.bf16 %v1195_v23, %v1194_v39  ;;  %2354 = vpow2.f32 %v1678_v11  ;;  %v1200_v52 = vmul.f32 %v2333_v29, %v2853_v57 }
 0x177   :  { %v2337_v14 = vpop.eup %2336  ;;  %2000 = vst [vmem:[#allocation7 + $0xb8] sm:$0xff] %v1936_v49   ;;  %v1931_v58 = vpack.c.bf16 %v1227_v8, %v1226_v53  ;;  %2356 = vpow2.f32 %v1649_v17  ;;  %v1232_v6 = vmul.f32 %v2335_v1, %v2866_v30  ;;  %v3138_v53 = vld [vmem:[#allocation12_spill] sm:$0xff]  ;;  %v693_v8 = vmul.f32 %v2446_v20, %v2860_v9 }
 0x178   :  { %v3011_v31 = vpop.eup %2338  ;;  %1983 = vst [vmem:[#allocation7 + $0x30] sm:$0xff] %v1851_v54   ;;  %2358 = vpow2.f32 %v1681_v25  ;;  %v1198_v21 = vmul.f32 %v2337_v14, %v2876_v18  ;;  %v720_v49 = vmul.f32 %v2446_v20, %v3138_v53 }
 0x179   :  { %v2341_v36 = vpop.eup %2340  ;;  %1999 = vst [vmem:[#allocation7 + $0xb0] sm:$0xff] %v1931_v58   ;;  %2360 = vpow2.f32 %v1647_v47  ;;  %v3137_v47 = vld [vmem:[#allocation11_spill] sm:$0xff]  ;;  %v3139_v58 = vld [vmem:[#allocation13_spill] sm:$0xff] }
 0x17a   :  { %v2343_v44 = vpop.eup %2342  ;;  %v1201_v11 = vmul.f32 %v2341_v36, %v2889_v55  ;;  %2362 = vpow2.f32 %v1679_v5  ;;  %v3027_v55 = vadd.f32 %v2588_v42, %v690_v15  ;;  %v688_v28 = vmul.f32 %v2446_v20, %v3137_v47  ;;  %v2447_v5 = vld [vmem:[%s3125_s3] ss:$0 sm:$0xff]  ;;  %s2524_s3 = smov [#allocation7]  }
 0x17b   :  { %v2345_v37 = vpop.eup %2344  ;;  %v1233_v41 = vmul.f32 %v2343_v44, %v2899_v16  ;;  %2364 = vpow2.f32 %v1652_v33  ;;  %v3030_v16 = vadd.f32 %v2588_v42, %v722_v38  ;;  %v725_v33 = vmul.f32 %v2446_v20, %v3139_v58  ;;  %s1571_s20 = sshll.u32 %s2524_s3, 4  ;;  %s1572_s20 = int_to_ptr.vmem [resolvable:$true] %s1571_s20 }
 0x17c   :  { %v2347_v7 = vpop.eup %2346  ;;  %v1866_v3 = vpack.c.bf16 %v1201_v11, %v1200_v52  ;;  %v1199_v40 = vmul.f32 %v2345_v37, %v2905_v19  ;;  %2366 = vpow2.f32 %v1684_v0  ;;  %v1653_v39 = vmul.f32 -1.442695, %v3027_v55  ;;  %v3141_v52 = vld [vmem:[#allocation16_spill] sm:$0xff]  ;;  %s2492_s21 = scalar_lea.vmem %s1572_s20, 4096  ;;  %p2497_p3 = scmp.lt.s32.totalorder %s1572_s20, %s1572_s20 }
 0x17d   :  { %v2349_v62 = vpop.eup %2348  ;;  %v1946_v57 = vpack.c.bf16 %v1233_v41, %v1232_v6  ;;  %v1039_v17 = vadd.f32 1.0, %v2347_v7  ;;  %2368 = vpow2.f32 %v1650_v24  ;;  %v1685_v51 = vmul.f32 -1.442695, %v3030_v16  ;;  %v3140_v24 = vld [vmem:[#allocation14_spill] sm:$0xff]  ;;  %p2493_p2 = scmp.ne.s32.totalorder %s1572_s20, %s2492_s21  ;;  %p2498_p4 = scmp.lt.s32.totalorder %s2492_s21, %s2492_s21 }
 0x17e   :  { %v2351_v25 = vpop.eup %2350  ;;  %1986 = vst [vmem:[#allocation7 + $0x48] sm:$0xff] %v1866_v3   ;;  %v1861_v30 = vpack.c.bf16 %v1199_v40, %v1198_v21  ;;  %v1012_v61 = vadd.f32 1.0, %v2349_v62  ;;  %2370 = vpow2.f32 %v1682_v4  ;;  %v3043_v14 = vadd.f32 %v2447_v5, %v688_v28  ;;  %v3142_v4 = vld [vmem:[#allocation17_spill] sm:$0xff] }
 0x17f   :  { %v2353_v18 = vpop.eup %2352  ;;  %2002 = vst [vmem:[#allocation7 + $0xc8] sm:$0xff] %v1946_v57   ;;  %2372 = vrcp.f32 %v1039_v17  ;;  %v1044_v19 = vadd.f32 1.0, %v2351_v25  ;;  %v691_v15 = vmul.f32 %v2446_v20, %v3140_v24  ;;  %v723_v38 = vmul.f32 %v2446_v20, %v2872_v34  ;;  %v3143_v34 = vld [vmem:[#allocation18_spill] sm:$0xff]  ;;  %p2499_p5 = por %p2498_p4, %p2497_p3 }
 0x180   :  { %v2355_v27 = vpop.eup %2354  ;;  %1985 = vst [vmem:[#allocation7 + $0x40] sm:$0xff] %v1861_v30   ;;  %2374 = vrcp.f32 %v1012_v61  ;;  %v1010_v46 = vadd.f32 1.0, %v2353_v18  ;;  %v694_v11 = vmul.f32 %v2446_v20, %v3141_v52  ;;  %v726_v37 = vmul.f32 %v2446_v20, %v3142_v4  ;;  %v3144_v30 = vld [vmem:[#allocation15_spill] sm:$0xff] }
 0x181   :  { %v2357_v56 = vpop.eup %2356  ;;  %2376 = vrcp.f32 %v1044_v19  ;;  %v1042_v32 = vadd.f32 1.0, %v2355_v27  ;;  %v3050_v7 = vadd.f32 %v2447_v5, %v720_v49  ;;  %v3052_v21 = vadd.f32 %v2447_v5, %v693_v8  ;;  %p2500_p6 = pnand %p2499_p5, %p2493_p2 }
 0x182   :  { %v2359_v48 = vpop.eup %2358  ;;  %2378 = vrcp.f32 %v1010_v46  ;;  %v1013_v42 = vadd.f32 1.0, %v2357_v56  ;;  %v1651_v62 = vmul.f32 -1.442695, %v3043_v14  ;;  %v3055_v57 = vadd.f32 %v2447_v5, %v725_v33 }
 0x183   :  { %v2361_v23 = vpop.eup %2360  ;;  %2380 = vrcp.f32 %v1042_v32  ;;  %v1045_v29 = vadd.f32 1.0, %v2359_v48  ;;  %v692_v17 = vmul.f32 %v2446_v20, %v3143_v34  ;;  %v1230_v61 = vmul.f32 %v3011_v31, %v3144_v30  ;;  %v3145_v48 = vld [vmem:[#allocation19_spill] sm:$0xff] }
 0x184   :  { %v2363_v1 = vpop.eup %2362  ;;  %2382 = vrcp.f32 %v1013_v42  ;;  %v1011_v54 = vadd.f32 1.0, %v2361_v23  ;;  %v3060_v18 = vadd.f32 %v2447_v5, %v691_v15  ;;  %v3062_v19 = vadd.f32 %v2447_v5, %v723_v38 }
 0x185   :  { %v2365_v0 = vpop.eup %2364  ;;  %2384 = vrcp.f32 %v1045_v29  ;;  %v1043_v36 = vadd.f32 1.0, %v2363_v1  ;;  %v3065_v47 = vadd.f32 %v2447_v5, %v694_v11  ;;  %v3067_v28 = vadd.f32 %v2447_v5, %v726_v37 }
 0x186   :  { %v2367_v44 = vpop.eup %2366  ;;  %2386 = vrcp.f32 %v1011_v54  ;;  %v1016_v9 = vadd.f32 1.0, %v2365_v0  ;;  %v1683_v32 = vmul.f32 -1.442695, %v3050_v7  ;;  %v724_v42 = vmul.f32 %v2446_v20, %v3145_v48 }
 0x187   :  { %v2369_v6 = vpop.eup %2368  ;;  %2388 = vrcp.f32 %v1043_v36  ;;  %v1048_v41 = vadd.f32 1.0, %v2367_v44  ;;  %v1656_v29 = vmul.f32 -1.442695, %v3052_v21  ;;  %v3072_v53 = vadd.f32 %v2447_v5, %v692_v17 }
 0x188   :  { %v2371_v3 = vpop.eup %2370  ;;  %v1014_v40 = vadd.f32 1.0, %v2369_v6  ;;  %2390 = vrcp.f32 %v1016_v9  ;;  %v1654_v8 = vmul.f32 -1.442695, %v3060_v18  ;;  %v1686_v54 = vmul.f32 -1.442695, %v3062_v19 }
 0x189   :  { %v2373_v25 = vpop.eup %2372  ;;  %2392 = vrcp.f32 %v1048_v41  ;;  %v1657_v20 = vmul.f32 -1.442695, %v3065_v47  ;;  %v1689_v58 = vmul.f32 -1.442695, %v3067_v28  ;;  %v1655_v38 = vmul.f32 -1.442695, %v3072_v53 }
 0x18a   :  { %v2375_v27 = vpop.eup %2374  ;;  %v1231_v46 = vmul.f32 %v2373_v25, %v2935_v26  ;;  %2394 = vrcp.f32 %v1014_v40  ;;  %v1688_v26 = vmul.f32 -1.442695, %v3055_v57 }
 0x18b   :  { %v2377_v56 = vpop.eup %2376  ;;  %2396 = vpow2.f32 %v1653_v39  ;;  %v1204_v33 = vmul.f32 %v2375_v27, %v2938_v63 }
 0x18c   :  { %v2379_v31 = vpop.eup %2378  ;;  %v1941_v23 = vpack.c.bf16 %v1231_v46, %v1230_v61  ;;  %2398 = vpow2.f32 %v1685_v51  ;;  %v3081_v51 = vadd.f32 %v2447_v5, %v724_v42  ;;  %v1236_v24 = vmul.f32 %v2377_v56, %v2943_v60 }
 0x18d   :  { %v2381_v49 = vpop.eup %2380  ;;  %2400 = vpow2.f32 %v1651_v62  ;;  %v1202_v9 = vmul.f32 %v2379_v31, %v2946_v22  ;;  %v1046_v22 = vadd.f32 1.0, %v2371_v3 }
 0x18e   :  { %v2383_v1 = vpop.eup %2382  ;;  %2001 = vst [vmem:[#allocation7 + $0xc0] sm:$0xff] %v1941_v23   ;;  %2402 = vpow2.f32 %v1683_v32  ;;  %v1234_v63 = vmul.f32 %v2381_v49, %v2955_v10 }
 0x18f   :  { %v2385_v39 = vpop.eup %2384  ;;  %v1205_v0 = vmul.f32 %v2383_v1, %v2962_v2  ;;  %2404 = vpow2.f32 %v1656_v29 }
 0x190   :  { %v2387_v36 = vpop.eup %2386  ;;  %v1237_v15 = vmul.f32 %v2385_v39, %v2965_v45  ;;  %2406 = vpow2.f32 %v1688_v26  ;;  %v1687_v45 = vmul.f32 -1.442695, %v3081_v51 }
 0x191   :  { %v2389_v44 = vpop.eup %2388  ;;  %v1876_v52 = vpack.c.bf16 %v1205_v0, %v1204_v33  ;;  %v1203_v11 = vmul.f32 %v2387_v36, %v2973_v59  ;;  %2408 = vpow2.f32 %v1654_v8 }
 0x192   :  { %v1956_v2 = vpack.c.bf16 %v1237_v15, %v1236_v24  ;;  %v1235_v5 = vmul.f32 %v2389_v44, %v2986_v43  ;;  %v2391_v4 = vpop.eup %2390  ;;  %2410 = vpow2.f32 %v1686_v54 }
 0x193   :  { %1988 = vst [vmem:[#allocation7 + $0x58] sm:$0xff] %v1876_v52   ;;  %v1871_v60 = vpack.c.bf16 %v1203_v11, %v1202_v9  ;;  %v2393_v37 = vpop.eup %2392  ;;  %2412 = vpow2.f32 %v1657_v20  ;;  %v1208_v39 = vmul.f32 %v2391_v4, %v2989_v13 }
 0x194   :  { %2004 = vst [vmem:[#allocation7 + $0xd8] sm:$0xff] %v1956_v2   ;;  %v1951_v6 = vpack.c.bf16 %v1235_v5, %v1234_v63  ;;  %v2395_v41 = vpop.eup %2394  ;;  %2414 = vpow2.f32 %v1689_v58  ;;  %v1240_v36 = vmul.f32 %v2393_v37, %v2997_v50 }
 0x195   :  { %1987 = vst [vmem:[#allocation7 + $0x50] sm:$0xff] %v1871_v60   ;;  %v2397_v59 = vpop.eup %2396  ;;  %2416 = vpow2.f32 %v1655_v38  ;;  %v1206_v38 = vmul.f32 %v2395_v41, %v3000_v35 }
 0x196   :  { %2003 = vst [vmem:[#allocation7 + $0xd0] sm:$0xff] %v1951_v6   ;;  %v2399_v10 = vpop.eup %2398  ;;  %v1017_v43 = vadd.f32 1.0, %v2397_v59  ;;  %2418 = vpow2.f32 %v1687_v45 }
 0x197   :  { %v2401_v40 = vpop.eup %2400  ;;  %2420 = vrcp.f32 %v1046_v22  ;;  %v1049_v62 = vadd.f32 1.0, %v2399_v10 }
 0x198   :  { %v2403_v34 = vpop.eup %2402  ;;  %2422 = vrcp.f32 %v1017_v43  ;;  %v1015_v17 = vadd.f32 1.0, %v2401_v40 }
 0x199   :  { %v2405_v25 = vpop.eup %2404  ;;  %2424 = vrcp.f32 %v1049_v62  ;;  %v1047_v30 = vadd.f32 1.0, %v2403_v34 }
 0x19a   :  { %v2407_v3 = vpop.eup %2406  ;;  %2426 = vrcp.f32 %v1015_v17  ;;  %v1020_v61 = vadd.f32 1.0, %v2405_v25 }
 0x19b   :  { %v2409_v27 = vpop.eup %2408  ;;  %2428 = vrcp.f32 %v1047_v30  ;;  %v1052_v46 = vadd.f32 1.0, %v2407_v3 }
 0x19c   :  { %v2411_v56 = vpop.eup %2410  ;;  %2430 = vrcp.f32 %v1020_v61  ;;  %v1018_v32 = vadd.f32 1.0, %v2409_v27 }
 0x19d   :  { %v2413_v48 = vpop.eup %2412  ;;  %2432 = vrcp.f32 %v1052_v46  ;;  %v1050_v42 = vadd.f32 1.0, %v2411_v56 }
 0x19e   :  { %v2415_v31 = vpop.eup %2414  ;;  %2434 = vrcp.f32 %v1018_v32  ;;  %v1021_v23 = vadd.f32 1.0, %v2413_v48 }
 0x19f   :  { %v2417_v29 = vpop.eup %2416  ;;  %2436 = vrcp.f32 %v1050_v42  ;;  %v1053_v49 = vadd.f32 1.0, %v2415_v31 }
 0x1a0   :  { %v2419_v26 = vpop.eup %2418  ;;  %2438 = vrcp.f32 %v1021_v23  ;;  %v1019_v8 = vadd.f32 1.0, %v2417_v29 }
 0x1a1   :  { %v2421_v1 = vpop.eup %2420  ;;  %2440 = vrcp.f32 %v1053_v49  ;;  %v1051_v54 = vadd.f32 1.0, %v2419_v26 }
 0x1a2   :  { %v2423_v20 = vpop.eup %2422  ;;  %2442 = vrcp.f32 %v1019_v8  ;;  %v1238_v11 = vmul.f32 %v2421_v1, %v3008_v12 }
 0x1a3   :  { %v2425_v58 = vpop.eup %2424  ;;  %v1209_v33 = vmul.f32 %v2423_v20, %v3027_v55  ;;  %2444 = vrcp.f32 %v1051_v54 }
 0x1a4   :  { %v2427_v0 = vpop.eup %2426  ;;  %v1241_v24 = vmul.f32 %v2425_v58, %v3030_v16 }
 0x1a5   :  { %v2429_v15 = vpop.eup %2428  ;;  %v1886_v44 = vpack.c.bf16 %v1209_v33, %v1208_v39  ;;  %v1207_v9 = vmul.f32 %v2427_v0, %v3043_v14 }
 0x1a6   :  { %v2431_v52 = vpop.eup %2430  ;;  %v1966_v63 = vpack.c.bf16 %v1241_v24, %v1240_v36  ;;  %v1239_v13 = vmul.f32 %v2429_v15, %v3050_v7 }
 0x1a7   :  { %v2433_v2 = vpop.eup %2432  ;;  %1990 = vst [vmem:[#allocation7 + $0x68] sm:$0xff] %v1886_v44   ;;  %v1881_v55 = vpack.c.bf16 %v1207_v9, %v1206_v38  ;;  %v1212_v60 = vmul.f32 %v2431_v52, %v3052_v21 }
 0x1a8   :  { %v2435_v5 = vpop.eup %2434  ;;  %2006 = vst [vmem:[#allocation7 + $0xe8] sm:$0xff] %v1966_v63   ;;  %v1961_v50 = vpack.c.bf16 %v1239_v13, %v1238_v11  ;;  %v1244_v12 = vmul.f32 %v2433_v2, %v3055_v57 }
 0x1a9   :  { %v2437_v4 = vpop.eup %2436  ;;  %1989 = vst [vmem:[#allocation7 + $0x60] sm:$0xff] %v1881_v55   ;;  %v1210_v6 = vmul.f32 %v2435_v5, %v3060_v18 }
 0x1aa   :  { %v2439_v16 = vpop.eup %2438  ;;  %2005 = vst [vmem:[#allocation7 + $0xe0] sm:$0xff] %v1961_v50   ;;  %v1242_v59 = vmul.f32 %v2437_v4, %v3062_v19 }
 0x1ab   :  { %v2441_v35 = vpop.eup %2440  ;;  %v1213_v14 = vmul.f32 %v2439_v16, %v3065_v47 }
 0x1ac   :  { %v2443_v45 = vpop.eup %2442  ;;  %v1245_v7 = vmul.f32 %v2441_v35, %v3067_v28 }
 0x1ad   :  { %v2445_v37 = vpop.eup %2444  ;;  %v1896_v22 = vpack.c.bf16 %v1213_v14, %v1212_v60  ;;  %v1211_v41 = vmul.f32 %v2443_v45, %v3072_v53 }
 0x1ae   :  { %v1976_v10 = vpack.c.bf16 %v1245_v7, %v1244_v12  ;;  %v1243_v21 = vmul.f32 %v2445_v37, %v3081_v51 }
 0x1af   :  { %1992 = vst [vmem:[#allocation7 + $0x78] sm:$0xff] %v1896_v22   ;;  %v1891_v47 = vpack.c.bf16 %v1211_v41, %v1210_v6 }
 0x1b0   :  { %2008 = vst [vmem:[#allocation7 + $0xf8] sm:$0xff] %v1976_v10   ;;  %v1971_v43 = vpack.c.bf16 %v1243_v21, %v1242_v59 }
 0x1b1   :  { %1991 = vst [vmem:[#allocation7 + $0x70] sm:$0xff] %v1891_v47  }
 0x1b2   :  { %2007 = vst [vmem:[#allocation7 + $0xf0] sm:$0xff] %v1971_v43  }
 0x1b3   :  { %2503 = shalt.err (!%p2500_p6)
}
 0x1b4   :  { %s2504_s24 = scalar_lea.hbm %s3126_s4, 4096 }
 0x1b5   :  { %p2505_p7 = scmp.ne.s32.totalorder %s3126_s4, %s2504_s24  ;;  %p2508_p8 = scmp.lt.u32.totalorder %s2504_s24, %s3126_s4 }
 0x1b7   :  { %p2510_p9 = pnand %p2508_p8, %p2505_p7 }
 0x1b9   :  { %2513 = shalt.err (!%p2510_p9)
}
 0x1ba   :  { %1577 = dma.vmem_to_hbm [thread:$0]  %s1572_s20, 4096, %s3126_s4, [#allocation4], %s2521_s25, %s2521_s25, %s2522_s26  }
 0x1bb   :  { %2518 = dma.done.wait [#allocation4], 4096  }
 0x1bc   :  { %2519 = vsyncadd [#allocation4], 4294963200 }
 0x1bd   :  { %1581 = vsyncpa [#allocation3], 1 }
 0x1be   :  { %1582 = vsyncpa [#allocation6], 1 }
 0x1bf   :  { %1583 = vsyncpa [#allocation4], 1 }

</bundles_post_ra>
